<compile_context>
chip_gen: v7x
topology: tpu7x:2x2x1
jax: 0.10.0
libtpu: 0.0.40
codegen_flags: <defaults>
</compile_context>

<pallas_src>
import functools

import jax
import jax.numpy as jnp
from jax.experimental import pallas as pl
from jax.experimental.pallas import tpu as pltpu

_BLOCK_T = 1024          # max target-dim tile (columns of W2 / logits)
_VMEM_BUDGET = 40 << 20  # working-set budget used when picking the batch tile


def _round_up(x: int, m: int) -> int:
    return ((x + m - 1) // m) * m


# ---------------------------------------------------------------------------
# Kernel: one (batch-tile, target-tile) grid step.
# ---------------------------------------------------------------------------
def classifier_kernel(x_ref, w1_ref, b1_ref, w2_ref, b2_ref, out_ref, mid_ref):
    # x:   [bm, E]  f32/bf16   w1: [E, H]  bf16   b1: [1, H]  f32
    # w2:  [H, tn]  bf16       b2: [1, tn] f32    out:[bm, tn] out dtype
    # mid: [bm, H]  bf16 VMEM scratch (layer-1 activations, reused across j)

    # Layer 1 runs once per batch tile (j is the inner grid axis).
    @pl.when(pl.program_id(1) == 0)
    def _():
        x = x_ref[...].astype(jnp.bfloat16)              # cast on the VPU
        h = jnp.dot(x, w1_ref[...], preferred_element_type=jnp.float32)
        h = jnp.maximum(h + b1_ref[...], 0.0)            # fused bias + ReLU
        mid_ref[...] = h.astype(jnp.bfloat16)

    # Layer 2 for this target tile (bf16 operands, f32 accumulation on MXU).
    logit = jnp.dot(mid_ref[...], w2_ref[...], preferred_element_type=jnp.float32)
    out_ref[...] = (logit + b2_ref[...]).astype(out_ref.dtype)


# ---------------------------------------------------------------------------
# One-time weight preparation (outside the per-call hot path).
# ---------------------------------------------------------------------------
def prepare_classifier_params(w1, b1, w2, b2):
    """w1: [E, H], b1: [H], w2: [H, T], b2: [T]  (weights already transposed).

    Returns (w1_p, b1_p, w2_p, b2_p): zero-padded, weights cast to bf16."""
    E, H = w1.shape
    T = w2.shape[1]
    E_p = _round_up(E, 16)              # cheap sublane alignment only
    H_p = _round_up(H, 128)
    T_p = _round_up(T, 128)
    if T_p > _BLOCK_T:                  # tiled target dim: tile must divide T_p
        T_p = _round_up(T_p, _BLOCK_T)

    w1_p = jnp.pad(w1, ((0, E_p - E), (0, H_p - H))).astype(jnp.bfloat16)
    w2_p = jnp.pad(w2, ((0, H_p - H), (0, T_p - T))).astype(jnp.bfloat16)
    b1_p = jnp.pad(b1, (0, H_p - H)).astype(jnp.float32).reshape(1, H_p)
    b2_p = jnp.pad(b2, (0, T_p - T)).astype(jnp.float32).reshape(1, T_p)
    return w1_p, b1_p, w2_p, b2_p


def _pick_batch_tile(B, E_p, H_p, tn, nt, x_itemsize, out_itemsize, block_m):
    if B <= 16:
        bm = _round_up(B, 8)
    else:
        # >= 2 batch tiles whenever the batch is big enough, so v7x megacore
        # sharding on the "parallel" axis actually engages.
        bm = min(block_m, _round_up((B + 1) // 2, 8))

    def working_set(bm):
        w_bufs = 1 if nt == 1 else 2
        return (2 * bm * E_p * x_itemsize              # x tile, double-buffered
                + 2 * bm * tn * out_itemsize           # out tile, double-buffered
                + bm * H_p * 2                         # mid scratch (bf16)
                + bm * H_p * 4 + bm * tn * 4           # f32 compute temporaries
                + E_p * H_p * 2 + H_p * 4              # w1 + b1 (single-buffered)
                + w_bufs * (H_p * tn * 2 + tn * 4))    # w2 + b2

    while working_set(bm) > _VMEM_BUDGET and bm > 8:
        bm = max(8, _round_up(bm // 2, 8))
    return bm, working_set(bm)


# ---------------------------------------------------------------------------
# Hot-path forward.
# ---------------------------------------------------------------------------
@functools.partial(jax.jit, static_argnames=("target_size", "block_m", "out_dtype"))
def classifier_forward(hidden, w1_p, b1_p, w2_p, b2_p, *, target_size,
                       block_m=512, out_dtype=None):
    """hidden: [B, E] -> logits [B, target_size].

    Weights must come from `prepare_classifier_params` (padded, bf16)."""
    B, E = hidden.shape
    E_p, H_p = w1_p.shape
    T_p = w2_p.shape[1]
    out_dtype = jnp.dtype(out_dtype) if out_dtype is not None else hidden.dtype

    tn = min(T_p, _BLOCK_T)
    assert T_p % tn == 0 and H_p % 128 == 0, "use prepare_classifier_params()"
    nt = T_p // tn

    bm, need = _pick_batch_tile(B, E_p, H_p, tn, nt,
                                jnp.dtype(hidden.dtype).itemsize,
                                jnp.dtype(out_dtype).itemsize, block_m)
    B_p = _round_up(B, bm)
    nb = B_p // bm

    # Pad activations only when actually required (no 128-lane padding of E;
    # the bf16 cast happens inside the kernel).
    pad_b, pad_e = B_p - B, E_p - E
    x = jnp.pad(hidden, ((0, pad_b), (0, pad_e))) if (pad_b or pad_e) else hidden

    resident = pl.Buffered(1)   # constant index_map -> single buffer is enough
    if nt == 1:
        w2_spec = pl.BlockSpec((H_p, tn), lambda i, j: (0, j), pipeline_mode=resident)
        b2_spec = pl.BlockSpec((1, tn), lambda i, j: (0, j), pipeline_mode=resident)
    else:
        w2_spec = pl.BlockSpec((H_p, tn), lambda i, j: (0, j))
        b2_spec = pl.BlockSpec((1, tn), lambda i, j: (0, j))

    out_p = pl.pallas_call(
        classifier_kernel,
        out_shape=jax.ShapeDtypeStruct((B_p, T_p), out_dtype),
        grid_spec=pltpu.PrefetchScalarGridSpec(
            num_scalar_prefetch=0,
            grid=(nb, nt),
            in_specs=[
                # Activations: tiled over batch, pipelined / double-buffered.
                pl.BlockSpec((bm, E_p), lambda i, j: (i, 0)),
                # Layer-1 weights/bias: constant block -> VMEM-resident, 1 buffer.
                pl.BlockSpec((E_p, H_p), lambda i, j: (0, 0), pipeline_mode=resident),
                pl.BlockSpec((1, H_p), lambda i, j: (0, 0), pipeline_mode=resident),
                # Layer-2 weights/bias: tiled over the target dim.
                w2_spec,
                b2_spec,
            ],
            out_specs=pl.BlockSpec((bm, tn), lambda i, j: (i, j)),
            scratch_shapes=[pltpu.VMEM((bm, H_p), jnp.bfloat16)],   # mid cache
        ),
        compiler_params=pltpu.CompilerParams(
            dimension_semantics=("parallel", "arbitrary"),  # batch shards on v7x
            vmem_limit_bytes=min(max(int(need * 1.5) + (2 << 20), 8 << 20),
                                 48 << 20),
        ),
    )(x, w1_p, b1_p, w2_p, b2_p)

    if B_p != B or T_p != target_size:                    # skip when aligned
        out_p = out_p[:B, :target_size]
    return out_p


# ---------------------------------------------------------------------------
# Demo / self-test.
# ---------------------------------------------------------------------------
def _torch_linear_init(key, in_dim, out_dim, dtype=jnp.float32):
    """nn.Linear-style init: uniform(+/- 1/sqrt(in_dim)); W stored as [in, out]."""
    kw, kb = jax.random.split(key)
    bound = 1.0 / jnp.sqrt(jnp.array(in_dim, dtype))
    w = jax.random.uniform(kw, (in_dim, out_dim), dtype, -bound, bound)
    b = jax.random.uniform(kb, (out_dim,), dtype, -bound, bound)
    return w, b


def _reference(hidden, w1, b1, w2, b2):
    """Same numerics as the kernel: bf16 operands, f32 accumulation."""
    q = lambda a: a.astype(jnp.bfloat16).astype(jnp.float32)
    mid = jnp.maximum(q(hidden) @ q(w1) + b1, 0.0)
    return q(mid) @ q(w2) + b2


if __name__ == "__main__":
    key = jax.random.PRNGKey(0)
    k1, k2 = jax.random.split(key)

    # ---- Case 1: small shapes implied by the module -------------------------
    batch, embed_dim, hidden_dim, target_size = 8, 32, 64, 16
    k_x, k_top, k_bot = jax.random.split(k1, 3)
    hidden = jax.random.normal(k_x, (batch, embed_dim), jnp.float32)
    w1, b1 = _torch_linear_init(k_top, embed_dim, hidden_dim)     # self.top
    w2, b2 = _torch_linear_init(k_bot, hidden_dim, target_size)   # self.bottom

    params = prepare_classifier_params(w1, b1, w2, b2)            # one-time prep
    logit = classifier_forward(hidden, *params, target_size=target_size)
    jax.block_until_ready(logit)
    assert logit.shape == (batch, target_size)
    assert jnp.allclose(logit, _reference(hidden, w1, b1, w2, b2),
                        atol=1e-3, rtol=1e-3)
    ref_f32 = jnp.maximum(hidden @ w1 + b1, 0.0) @ w2 + b2        # f32 PyTorch fwd
    assert jnp.allclose(logit, ref_f32, atol=5e-2, rtol=5e-2)

    # ---- Case 2: multi-tile batch, padded hidden dim, tiled target dim,
    #              bf16 output -----------------------------------------------
    batch2, embed2, hid2, tgt2 = 48, 32, 96, 1100
    k_x2, k_t2, k_b2 = jax.random.split(k2, 3)
    hidden2 = jax.random.normal(k_x2, (batch2, embed2), jnp.float32)
    w1_2, b1_2 = _torch_linear_init(k_t2, embed2, hid2)
    w2_2, b2_2 = _torch_linear_init(k_b2, hid2, tgt2)
    params2 = prepare_classifier_params(w1_2, b1_2, w2_2, b2_2)
    logit2 = classifier_forward(hidden2, *params2, target_size=tgt2,
                                out_dtype=jnp.bfloat16)
    jax.block_until_ready(logit2)
    assert logit2.shape == (batch2, tgt2) and logit2.dtype == jnp.bfloat16
    ref2 = _reference(hidden2, w1_2, b1_2, w2_2, b2_2)
    assert jnp.allclose(logit2.astype(jnp.float32), ref2, atol=5e-2, rtol=5e-2)

    print("KERNEL_OK")
</pallas_src>

<mosaic_0001>
module attributes {stable_mosaic.version = 11 : i64} {
  func.func @classifier_kernel(%arg0: i32, %arg1: i32, %arg2: memref<8x32xf32, #tpu.memory_space<vmem>>, %arg3: memref<32x128xbf16, #tpu.memory_space<vmem>>, %arg4: memref<1x128xf32, #tpu.memory_space<vmem>>, %arg5: memref<128x128xbf16, #tpu.memory_space<vmem>>, %arg6: memref<1x128xf32, #tpu.memory_space<vmem>>, %arg7: memref<8x128xf32, #tpu.memory_space<vmem>>, %arg8: memref<8x128xbf16, #tpu.memory_space<vmem>>) attributes {dimension_semantics = [#tpu.dimension_semantics<parallel>, #tpu.dimension_semantics<arbitrary>], iteration_bounds = array<i64: 1, 1>, scalar_prefetch = 0 : i64, scratch_operands = 1 : i64, tpu.core_type = #tpu.core_type<tc>, window_params = [{transform_indices = @transform_0, window_bounds = array<i64: 8, 32>}, {pipeline_mode = #tpu.pipeline_mode<synchronous>, transform_indices = @transform_1, window_bounds = array<i64: 32, 128>}, {pipeline_mode = #tpu.pipeline_mode<synchronous>, transform_indices = @transform_2, window_bounds = array<i64: 1, 128>}, {pipeline_mode = #tpu.pipeline_mode<synchronous>, transform_indices = @transform_3, window_bounds = array<i64: 128, 128>}, {pipeline_mode = #tpu.pipeline_mode<synchronous>, transform_indices = @transform_4, window_bounds = array<i64: 1, 128>}, {transform_indices = @transform_5, window_bounds = array<i64: 8, 128>}]} {
    %c0_i32 = arith.constant 0 : i32
    %0 = arith.cmpi eq, %arg1, %c0_i32 : i32
    %1 = arith.extui %0 : i1 to i32
    %c0_i32_0 = arith.constant 0 : i32
    %2 = arith.cmpi ne, %1, %c0_i32_0 : i32
    scf.if %2 {
      %c0_8 = arith.constant 0 : index
      %c0_9 = arith.constant 0 : index
      %10 = vector.load %arg2[%c0_8, %c0_9] : memref<8x32xf32, #tpu.memory_space<vmem>>, vector<8x32xf32>
      %11 = arith.truncf %10 : vector<8x32xf32> to vector<8x32xbf16>
      %c0_10 = arith.constant 0 : index
      %c0_11 = arith.constant 0 : index
      %12 = vector.load %arg3[%c0_10, %c0_11] : memref<32x128xbf16, #tpu.memory_space<vmem>>, vector<32x128xbf16>
      %cst_12 = arith.constant dense<0.000000e+00> : vector<8x128xf32>
      %13 = tpu.matmul %11, %12, %cst_12 {dimension_numbers = #tpu.dot_dimension_numbers<[1], [0], [0], [1], [0, 0, 1, 1], [], []>} : vector<8x32xbf16>, vector<32x128xbf16>, vector<8x128xf32> -> vector<8x128xf32>
      %c0_13 = arith.constant 0 : index
      %c0_14 = arith.constant 0 : index
      %14 = vector.load %arg4[%c0_13, %c0_14] : memref<1x128xf32, #tpu.memory_space<vmem>>, vector<1x128xf32>
      %15 = vector.broadcast %14 : vector<1x128xf32> to vector<8x128xf32>
      %16 = arith.addf %13, %15 : vector<8x128xf32>
      %cst_15 = arith.constant 0.000000e+00 : f32
      %17 = vector.broadcast %cst_15 : f32 to vector<8x128xf32>
      %18 = arith.maximumf %16, %17 : vector<8x128xf32>
      %19 = arith.truncf %18 : vector<8x128xf32> to vector<8x128xbf16>
      %c0_16 = arith.constant 0 : index
      %c0_17 = arith.constant 0 : index
      %20 = vector.load %arg8[%c0_16, %c0_17] : memref<8x128xbf16, #tpu.memory_space<vmem>>, vector<8x128xbf16>
      tpu.vector_store %arg8[%c0_16, %c0_17], %19 {strides = array<i32>} : memref<8x128xbf16, #tpu.memory_space<vmem>>, vector<8x128xbf16>,
    } else {
    }
    %c0 = arith.constant 0 : index
    %c0_1 = arith.constant 0 : index
    %3 = vector.load %arg8[%c0, %c0_1] : memref<8x128xbf16, #tpu.memory_space<vmem>>, vector<8x128xbf16>
    %c0_2 = arith.constant 0 : index
    %c0_3 = arith.constant 0 : index
    %4 = vector.load %arg5[%c0_2, %c0_3] : memref<128x128xbf16, #tpu.memory_space<vmem>>, vector<128x128xbf16>
    %cst = arith.constant dense<0.000000e+00> : vector<8x128xf32>
    %5 = tpu.matmul %3, %4, %cst {dimension_numbers = #tpu.dot_dimension_numbers<[1], [0], [0], [1], [0, 0, 1, 1], [], []>} : vector<8x128xbf16>, vector<128x128xbf16>, vector<8x128xf32> -> vector<8x128xf32>
    %c0_4 = arith.constant 0 : index
    %c0_5 = arith.constant 0 : index
    %6 = vector.load %arg6[%c0_4, %c0_5] : memref<1x128xf32, #tpu.memory_space<vmem>>, vector<1x128xf32>
    %7 = vector.broadcast %6 : vector<1x128xf32> to vector<8x128xf32>
    %8 = arith.addf %5, %7 : vector<8x128xf32>
    %c0_6 = arith.constant 0 : index
    %c0_7 = arith.constant 0 : index
    %9 = vector.load %arg7[%c0_6, %c0_7] : memref<8x128xf32, #tpu.memory_space<vmem>>, vector<8x128xf32>
    tpu.vector_store %arg7[%c0_6, %c0_7], %8 {strides = array<i32>} : memref<8x128xf32, #tpu.memory_space<vmem>>, vector<8x128xf32>,
    return
  }
  func.func @transform_0(%arg0: i32, %arg1: i32) -> (i32, i32) {
    %c0_i32 = arith.constant 0 : i32
    %c0_i32_0 = arith.constant 0 : i32
    return %arg0, %c0_i32 : i32, i32
  }
  func.func @transform_1(%arg0: i32, %arg1: i32) -> (i32, i32) {
    %c0_i32 = arith.constant 0 : i32
    %c0_i32_0 = arith.constant 0 : i32
    %c0_i32_1 = arith.constant 0 : i32
    return %c0_i32, %c0_i32_0 : i32, i32
  }
  func.func @transform_2(%arg0: i32, %arg1: i32) -> (i32, i32) {
    %c0_i32 = arith.constant 0 : i32
    %c0_i32_0 = arith.constant 0 : i32
    %c0_i32_1 = arith.constant 0 : i32
    return %c0_i32, %c0_i32_0 : i32, i32
  }
  func.func @transform_3(%arg0: i32, %arg1: i32) -> (i32, i32) {
    %c0_i32 = arith.constant 0 : i32
    %c0_i32_0 = arith.constant 0 : i32
    return %c0_i32, %arg1 : i32, i32
  }
  func.func @transform_4(%arg0: i32, %arg1: i32) -> (i32, i32) {
    %c0_i32 = arith.constant 0 : i32
    %c0_i32_0 = arith.constant 0 : i32
    return %c0_i32, %arg1 : i32, i32
  }
  func.func @transform_5(%arg0: i32, %arg1: i32) -> (i32, i32) {
    %c0_i32 = arith.constant 0 : i32
    return %arg0, %arg1 : i32, i32
  }
}

</mosaic_0001>

<bundles_post_ra>
// kernel: classifier_forward.1
= control target key start
LH: loop header
LB: loop body
LE: loop exit
PB: predicated region body
PF: predicated region fallthrough
CT: control target
= control target key end

     0   :  { %10 = vsyncpa [#allocation4], 0  ;;  %s529_s0 = inlined_call_operand.hbm [shape: f32[8,32], index: 0, kind: input, shape index: {}]   ;;  %s530_s1 = inlined_call_operand.hbm [shape: bf16[32,128], index: 1, kind: input, shape index: {}]   ;;  %s531_s2 = inlined_call_operand.vmem [shape: f32[1,128], index: 2, kind: input, shape index: {}]   ;;  %s532_s3 = inlined_call_operand.hbm [shape: bf16[128,128], index: 3, kind: input, shape index: {}]   ;;  %s533_s4 = inlined_call_operand.vmem [shape: f32[1,128], index: 4, kind: input, shape index: {}]   ;;  %s534_s5 = inlined_call_operand.hbm [shape: f32[8,128], index: 5, kind: output, shape index: {}]  }
   0x1   :  { %11 = vsyncpa [#allocation7], 0 }
   0x2   :  { %12 = vsyncpa [#allocation5], 0  ;;  %s431_s18 = smov [#allocation6]   ;;  %s337_s22 = scalar_lea.hbm %s530_s1, 256 }
   0x3   :  { %s28_s19 = sshll.u32 %s431_s18, 4  ;;  %p338_p0 = scmp.ne.s32.totalorder %s530_s1, %s337_s22  ;;  %s29_s19 = int_to_ptr.vmem [resolvable:$true] %s28_s19 }
   0x4   :  { %p341_p1 = scmp.lt.u32.totalorder %s337_s22, %s530_s1 }
   0x6   :  { %p343_p2 = pnand %p341_p1, %p338_p0 }
   0x8   :  { %346 = shalt.err (!%p343_p2)
}
   0x9   :  { %s347_s27 = scalar_lea.vmem %s29_s19, 256  ;;  %p352_p4 = scmp.lt.s32.totalorder %s29_s19, %s29_s19 }
   0xa   :  { %p348_p3 = scmp.ne.s32.totalorder %s29_s19, %s347_s27  ;;  %p353_p5 = scmp.lt.s32.totalorder %s347_s27, %s347_s27 }
   0xc   :  { %p354_p6 = por %p353_p5, %p352_p4 }
   0xe   :  { %p355_p7 = pnand %p354_p6, %p348_p3 }
  0x10   :  { %358 = shalt.err (!%p355_p7)
}
  0x11   :  { %s432_s28 = smov 64   ;;  %s433_s29 = smov 4  }
  0x12   :  { %34 = dma.hbm_to_vmem [thread:$0]  %s530_s1, 256, %s29_s19, [#allocation7], %s432_s28, %s432_s28, %s433_s29  }
  0x13   :  { %s434_s7 = smov [#allocation3]   ;;  %s435_s9 = smov [#allocation8]  }
  0x14   :  { %s19_s8 = sshll.u32 %s434_s7, 4  ;;  %s42_s10 = sshll.u32 %s435_s9, 4  ;;  %s20_s8 = int_to_ptr.vmem [resolvable:$true] %s19_s8  ;;  %s43_s10 = int_to_ptr.vmem [resolvable:$true] %s42_s10 }
  0x15   :  { %s359_s13 = scalar_lea.hbm %s529_s0, 128 }
  0x16   :  { %p360_p8 = scmp.ne.s32.totalorder %s529_s0, %s359_s13  ;;  %p363_p9 = scmp.lt.u32.totalorder %s359_s13, %s529_s0 }
  0x18   :  { %p365_p10 = pnand %p363_p9, %p360_p8 }
  0x1a   :  { %368 = shalt.err (!%p365_p10)
}
  0x1b   :  { %s369_s1 = scalar_lea.vmem %s20_s8, 128  ;;  %p374_p12 = scmp.lt.s32.totalorder %s20_s8, %s20_s8 }
  0x1c   :  { %p370_p11 = scmp.ne.s32.totalorder %s20_s8, %s369_s1  ;;  %p375_p13 = scmp.lt.s32.totalorder %s369_s1, %s369_s1 }
  0x1e   :  { %p376_p0 = por %p375_p13, %p374_p12 }
  0x20   :  { %p377_p1 = pnand %p376_p0, %p370_p11 }
  0x22   :  { %380 = shalt.err (!%p377_p1)
}
  0x23   :  { %22 = dma.hbm_to_vmem [thread:$0]  %s529_s0, 128, %s20_s8, [#allocation4]  }
  0x24   :  { %s381_s22 = scalar_lea.hbm %s532_s3, 1024 }
  0x25   :  { %p382_p2 = scmp.ne.s32.totalorder %s532_s3, %s381_s22  ;;  %p385_p3 = scmp.lt.u32.totalorder %s381_s22, %s532_s3 }
  0x27   :  { %p387_p4 = pnand %p385_p3, %p382_p2 }
  0x29   :  { %390 = shalt.err (!%p387_p4)
}
  0x2a   :  { %s391_s27 = scalar_lea.vmem %s43_s10, 1024  ;;  %p396_p6 = scmp.lt.s32.totalorder %s43_s10, %s43_s10 }
  0x2b   :  { %p392_p5 = scmp.ne.s32.totalorder %s43_s10, %s391_s27  ;;  %p397_p7 = scmp.lt.s32.totalorder %s391_s27, %s391_s27 }
  0x2d   :  { %p398_p8 = por %p397_p7, %p396_p6 }
  0x2f   :  { %p399_p9 = pnand %p398_p8, %p392_p5 }
  0x31   :  { %402 = shalt.err (!%p399_p9)
}
  0x32   :  { %48 = dma.hbm_to_vmem [thread:$0]  %s532_s3, 1024, %s43_s10, [#allocation7], %s432_s28, %s432_s28, %s433_s29  }
  0x33   :  { %425 = dma.done.wait [#allocation4], 128  }
  0x34   :  { %426 = vsyncadd [#allocation4], 4294967168 }
  0x35   :  { %427 = dma.done.wait [#allocation7], 1280  }
  0x36   :  { %428 = vsyncadd [#allocation7], 4294966016  ;;  %v436_v0 = vmov 0.0   ;;  %vm437_vm0 = vmmov 0   ;;  %v327_v1 = vld [vmem:[#allocation6] sm:$0xff]   ;;  %v328_v2 = vld [vmem:[#allocation6 + $0x8] sm:$0xff]  }
  0x37   :  { %291 = vmatprep.subr.bf16.mxu0 %v436_v0  ;;  %295 = vmatprep.mubr.msk.bf16.mxu0 %vm437_vm0, %v436_v0  ;;  %v65_v3 = vld [vmem:[#allocation3] sm:$0xff]  ;;  %v329_v4 = vld [vmem:[#allocation8] sm:$0xff]   ;;  %vm90_vm1 = vcmask 261120   ;;  %v331_v7 = vld [vmem:[#allocation8 + $0x10] sm:$0xff]   ;;  %s438_s7 = smov [#allocation9]  }
  0x38   :  { %299 = vmatprep.subr.bf16.mxu1 %v436_v0  ;;  %315 = vmatprep.mubr.msk.bf16.mxu1 %vm437_vm0, %v436_v0  ;;  %v66_v5 = vpack.c.bf16 %v65_v3, %v65_v3  ;;  %v330_v6 = vld [vmem:[#allocation8 + $0x8] sm:$0xff]   ;;  %v332_v8 = vld [vmem:[#allocation8 + $0x18] sm:$0xff]   ;;  %v333_v9 = vld [vmem:[#allocation8 + $0x20] sm:$0xff]   ;;  %s256_s8 = sshll.u32 %s438_s7, 4  ;;  %s257_s8 = int_to_ptr.vmem [resolvable:$true] %s256_s8 }
  0x39   :  { %292 = vmatpush3.bf16.msra.mxu0 %v327_v1  ;;  %300 = vmatpush3.bf16.msra.mxu1 %v329_v4  ;;  %v334_v10 = vld [vmem:[#allocation8 + $0x28] sm:$0xff]   ;;  %v335_v11 = vld [vmem:[#allocation8 + $0x30] sm:$0xff]   ;;  %v336_v12 = vld [vmem:[#allocation8 + $0x38] sm:$0xff]   ;;  %p408_p11 = scmp.lt.s32.totalorder %s257_s8, %s257_s8 }
  0x3a   :  { %293 = vmatprep.subr.bf16.mxu0 %v436_v0  ;;  %301 = vmatprep.subr.bf16.mxu1 %v436_v0  ;;  %v266_v13 = vld [vmem:[%s531_s2] ss:$0 sm:$0xff]  ;;  %s403_s2 = scalar_lea.vmem %s257_s8, 128 }
  0x3b   :  { %v270_v22 = vld [vmem:[%s533_s4] ss:$0 sm:$0xff]  ;;  %p404_p10 = scmp.ne.s32.totalorder %s257_s8, %s403_s2  ;;  %p409_p12 = scmp.lt.s32.totalorder %s403_s2, %s403_s2 }
  0x3d   :  { %294 = vmatpush3.bf16.msra.mxu0 %v328_v2  ;;  %302 = vmatpush3.bf16.msra.mxu1 %v330_v6  ;;  %p410_p13 = por %p409_p12, %p408_p11 }
  0x3e   :  { %303 = vmatprep.subr.bf16.mxu1 %v436_v0 }
  0x3f   :  { %p411_p0 = pnand %p410_p13, %p404_p10 }
  0x40   :  { %296 = vmatmul.mubr.msk.bf16.vlgmr.msra.gmra.mrb[0].mxu0 %vm90_vm1, %v66_v5 }
  0x41   :  { %304 = vmatpush3.bf16.msra.mxu1 %v331_v7 }
  0x42   :  { %305 = vmatprep.subr.bf16.mxu1 %v436_v0 }
  0x45   :  { %306 = vmatpush3.bf16.msra.mxu1 %v332_v8 }
  0x46   :  { %307 = vmatprep.subr.bf16.mxu1 %v436_v0 }
  0x49   :  { %308 = vmatpush3.bf16.msra.mxu1 %v333_v9 }
  0x4a   :  { %309 = vmatprep.subr.bf16.mxu1 %v436_v0 }
  0x4d   :  { %310 = vmatpush3.bf16.msra.mxu1 %v334_v10 }
  0x4e   :  { %311 = vmatprep.subr.bf16.mxu1 %v436_v0 }
  0x51   :  { %312 = vmatpush3.bf16.msra.mxu1 %v335_v11 }
  0x52   :  { %313 = vmatprep.subr.bf16.mxu1 %v436_v0 }
  0x55   :  { %314 = vmatpush3.bf16.msra.mxu1 %v336_v12 }
 0x113   :  { %v128_v14 = vpop.f32.mrb[0].mxu0 }
 0x114   :  { %v129_v15 = vadd.f32 %v266_v13, %v128_v14  ;;  %v297_v16 = vpop.f32.mrb[1].mxu0 }
 0x115   :  { %v131_v17 = vpop.f32.mrb[2].mxu0 }
 0x116   :  { %v134_v18 = vmax.f32 %v129_v15, 0.0  ;;  %v298_v19 = vpop.f32.mrb[3].mxu0 }
 0x118   :  { %v135_v20 = vpack.c.bf16 %v134_v18, %v134_v18 }
 0x11a   :  { %136 = vst [vmem:[#allocation2] sm:$0xf] %v135_v20 }
 0x121   :  { %v137_v21 = vld [vmem:[#allocation2] sm:$0xf] }
 0x122   :  { %316 = vmatmul.mubr.bf16.vlgmr.msra.gmra.mrb[0].mxu1 %v137_v21 }
 0x1f5   :  { %v243_v23 = vpop.f32.mrb[0].mxu1 }
 0x1f6   :  { %v244_v24 = vadd.f32 %v270_v22, %v243_v23  ;;  %v317_v25 = vpop.f32.mrb[1].mxu1 }
 0x1f7   :  { %v246_v26 = vpop.f32.mrb[2].mxu1 }
 0x1f8   :  { %249 = vst [vmem:[#allocation9] sm:$0xff] %v244_v24  ;;  %v318_v27 = vpop.f32.mrb[3].mxu1 }
 0x1f9   :  { %414 = shalt.err (!%p411_p0)
}
 0x1fa   :  { %s415_s4 = scalar_lea.hbm %s534_s5, 128 }
 0x1fb   :  { %p416_p1 = scmp.ne.s32.totalorder %s534_s5, %s415_s4  ;;  %p419_p2 = scmp.lt.u32.totalorder %s415_s4, %s534_s5 }
 0x1fd   :  { %p421_p3 = pnand %p419_p2, %p416_p1 }
 0x1ff   :  { %424 = shalt.err (!%p421_p3)
}
 0x200   :  { %259 = dma.vmem_to_hbm [thread:$0]  %s257_s8, 128, %s534_s5, [#allocation5]  }
 0x201   :  { %429 = dma.done.wait [#allocation5], 128  }
 0x202   :  { %430 = vsyncadd [#allocation5], 4294967168 }
 0x203   :  { %263 = vsyncpa [#allocation4], 1 }
 0x204   :  { %264 = vsyncpa [#allocation7], 1 }
 0x205   :  { %265 = vsyncpa [#allocation5], 1 }

</bundles_post_ra>
